<compile_context>
chip_gen: v7x
topology: tpu7x:2x2x1
jax: 0.10.0
libtpu: 0.0.40
codegen_flags: <defaults>
</compile_context>

<pallas_src>
import functools

import jax
import jax.numpy as jnp
from jax import lax
from jax.experimental import pallas as pl
from jax.experimental.pallas import tpu as pltpu


def _ceil_div(a, b):
    return -(-a // b)


def _round_up(a, b):
    return _ceil_div(a, b) * b


# ----------------------------------------------------------------------------
# Kernel 1: lane-dense patch-GEMM conv + per-tile per-channel sum / sum-of-sq
# ----------------------------------------------------------------------------
def conv_stats_kernel(w_ref, p_ref, y_ref, stats_ref):
    # w_ref: (C_out, K) bf16    p_ref: (K, TM) bf16
    # y_ref: (C_out, TM) bf16   stats_ref: (2*C_out, 128) f32
    y = jnp.dot(w_ref[...], p_ref[...], preferred_element_type=jnp.float32)
    y_ref[...] = y.astype(y_ref.dtype)           # bf16 intermediate (half HBM)

    c_out = y.shape[0]
    s = jnp.sum(y, axis=1, keepdims=True)        # (C_out, 1) lane-axis reduce
    q = jnp.sum(y * y, axis=1, keepdims=True)    # (C_out, 1)
    # One lane-dense partial-sum slab per grid step -> grid stays parallel.
    stats_ref[:c_out, :] = jnp.broadcast_to(s, (c_out, 128))
    stats_ref[c_out:, :] = jnp.broadcast_to(q, (c_out, 128))


# ----------------------------------------------------------------------------
# Kernel 2: fused BatchNorm affine (precomputed scale/shift) + ReLU
# ----------------------------------------------------------------------------
def bn_relu_kernel(y_ref, scale_ref, shift_ref, o_ref):
    # y_ref: (C_out, TM) bf16   scale/shift: (C_out, 1) f32   o_ref: f32
    y = y_ref[...].astype(jnp.float32)
    o_ref[...] = jnp.maximum(y * scale_ref[...] + shift_ref[...], 0.0)


@functools.partial(jax.jit, static_argnames=("tm", "eps"))
def down_forward(x, w, b, gamma, beta, *, eps=1e-5, tm=8192):
    """x: (N, C_in, D, H, W) f32 -> (N, 2*C_in, D//2, H//2, W//2) f32."""
    del b  # per-channel conv bias cancels exactly under training-mode BN

    N, C, D, H, W = x.shape
    C_out = w.shape[0]
    Do, Ho, Wo = D // 2, H // 2, W // 2
    K = C * 8
    S = Do * Ho * Wo                              # spatial volume per sample

    # ---- tile selection along the lane (S) axis ----------------------------
    tm = max(128, _round_up(int(tm), 128))        # lane-aligned tile cap
    want_tiles_s = max(1, _ceil_div(4, N))        # aim N*T_s >= ~4 (v7x 2 TCs)
    tm_s = min(tm, max(128, _round_up(_ceil_div(S, want_tiles_s), 128)))
    if tm_s >= S:
        tm_s = S                                  # full-S tile: no padding
    S_pad = _round_up(S, tm_s)
    T_s = S_pad // tm_s

    # ---- glue: bf16 FIRST (halves patchify transpose bytes), then patchify -
    xb = x.astype(jnp.bfloat16)
    xp = xb.reshape(N, C, Do, 2, Ho, 2, Wo, 2)
    xp = xp.transpose(0, 1, 3, 5, 7, 2, 4, 6)     # (N, C, kd,kh,kw, Do,Ho,Wo)
    patches = xp.reshape(N, K, S)                 # K ordered (c, kd, kh, kw)
    if S_pad != S:
        # Zero columns give exactly-zero conv outputs (bias dropped), so the
        # statistics divided by the real count N*S stay exact.
        patches = jnp.pad(patches, ((0, 0), (0, 0), (0, S_pad - S)))

    w2d = w.reshape(C_out, K).astype(jnp.bfloat16)     # (C_out, K)

    # ---- scoped-VMEM: only raise when a big tm needs it (v5e default 16MiB) -
    ws1 = 2 * (K * tm_s * 2 + C_out * tm_s * 2 + 2 * C_out * 128 * 4) + C_out * K * 2
    ws2 = 2 * (C_out * tm_s * 2 + C_out * tm_s * 4) + 2 * C_out * 4
    vlimit = None
    if max(ws1, ws2) > 12 * 1024 * 1024:
        vlimit = min(2 * max(ws1, ws2), 48 * 1024 * 1024)

    # ---- pass 1: conv GEMM + per-tile BN statistics -------------------------
    y16, stats = pl.pallas_call(
        conv_stats_kernel,
        out_shape=(
            jax.ShapeDtypeStruct((N, C_out, S_pad), jnp.bfloat16),
            jax.ShapeDtypeStruct((N, T_s, 2 * C_out, 128), jnp.float32),
        ),
        grid_spec=pltpu.PrefetchScalarGridSpec(
            num_scalar_prefetch=0,
            grid=(N, T_s),
            in_specs=[
                pl.BlockSpec((C_out, K), lambda n, j: (0, 0)),
                pl.BlockSpec((None, K, tm_s), lambda n, j: (n, 0, j)),
            ],
            out_specs=[
                pl.BlockSpec((None, C_out, tm_s), lambda n, j: (n, 0, j)),
                pl.BlockSpec((None, None, 2 * C_out, 128),
                             lambda n, j: (n, j, 0, 0)),
            ],
        ),
        compiler_params=pltpu.CompilerParams(
            dimension_semantics=("parallel", "parallel"),
            vmem_limit_bytes=vlimit),
        cost_estimate=pl.CostEstimate(
            flops=2 * C_out * K * N * S_pad,
            transcendentals=0,
            bytes_accessed=(C_out * K * 2 + N * K * S_pad * 2
                            + N * C_out * S_pad * 2
                            + N * T_s * 2 * C_out * 128 * 4)),
    )(w2d, patches)

    # ---- tiny scalar glue: fold partial sums into BN scale/shift ------------
    # TODO(synk): E[y^2]-E[y]^2 in f32 can cancel if |channel mean| >> std;
    # acceptable for realistic activations (a centered/Welford pass would need
    # a second stats kernel).
    tot = stats[:, :, :, 0].sum(axis=(0, 1))      # (2*C_out,)
    count = float(N * S)                          # divide by the REAL count
    mean = tot[:C_out] / count
    var = tot[C_out:] / count - mean * mean       # biased variance
    inv_std = lax.rsqrt(var + eps)
    scale = (gamma * inv_std).reshape(C_out, 1).astype(jnp.float32)
    shift = (beta - mean * gamma * inv_std).reshape(C_out, 1).astype(jnp.float32)

    # ---- pass 2: BN affine + ReLU, written directly in (N, C_out, S) --------
    out3d = pl.pallas_call(
        bn_relu_kernel,
        out_shape=jax.ShapeDtypeStruct((N, C_out, S_pad), jnp.float32),
        grid_spec=pltpu.PrefetchScalarGridSpec(
            num_scalar_prefetch=0,
            grid=(N, T_s),
            in_specs=[
                pl.BlockSpec((None, C_out, tm_s), lambda n, j: (n, 0, j)),
                pl.BlockSpec((C_out, 1), lambda n, j: (0, 0)),
                pl.BlockSpec((C_out, 1), lambda n, j: (0, 0)),
            ],
            out_specs=pl.BlockSpec((None, C_out, tm_s), lambda n, j: (n, 0, j)),
        ),
        compiler_params=pltpu.CompilerParams(
            dimension_semantics=("parallel", "parallel"),
            vmem_limit_bytes=vlimit),
        cost_estimate=pl.CostEstimate(
            flops=3 * N * C_out * S_pad,
            transcendentals=0,
            bytes_accessed=N * C_out * S_pad * (2 + 4) + 2 * C_out * 4),
    )(y16, scale, shift)

    # ---- output is already N-major: no trailing transpose -------------------
    if S_pad != S:
        out3d = out3d[:, :, :S]
    return out3d.reshape(N, C_out, Do, Ho, Wo)


# ----------------------------------------------------------------------------
# Pure-JAX reference for validation
# ----------------------------------------------------------------------------
def down_reference(x, w, b, gamma, beta, eps=1e-5):
    y = lax.conv_general_dilated(
        x, w, window_strides=(2, 2, 2), padding="VALID",
        dimension_numbers=("NCDHW", "OIDHW", "NCDHW"))
    y = y + b.reshape(1, -1, 1, 1, 1)
    mean = jnp.mean(y, axis=(0, 2, 3, 4), keepdims=True)
    var = jnp.mean((y - mean) ** 2, axis=(0, 2, 3, 4), keepdims=True)
    y = (y - mean) * lax.rsqrt(var + eps)
    y = y * gamma.reshape(1, -1, 1, 1, 1) + beta.reshape(1, -1, 1, 1, 1)
    return jnp.maximum(y, 0.0)


if __name__ == "__main__":
    # Small shapes consistent with Down(in_channels=4): input NCDHW.
    N, C_in, D, H, W = 2, 4, 8, 8, 8
    C_out = C_in * 2
    key = jax.random.PRNGKey(0)
    kx, kw, kb = jax.random.split(key, 3)

    x = jax.random.normal(kx, (N, C_in, D, H, W), dtype=jnp.float32)

    # Deterministic parameter init (PyTorch-style uniform fan-in for conv).
    fan_in = C_in * 2 * 2 * 2
    bound = 1.0 / (fan_in ** 0.5)
    w = jax.random.uniform(kw, (C_out, C_in, 2, 2, 2), jnp.float32, -bound, bound)
    b = jax.random.uniform(kb, (C_out,), jnp.float32, -bound, bound)
    gamma = jnp.ones((C_out,), jnp.float32)   # BatchNorm3d default init
    beta = jnp.zeros((C_out,), jnp.float32)

    out = down_forward(x, w, b, gamma, beta)
    out = jax.block_until_ready(out)

    ref = down_reference(x, w, b, gamma, beta)
    assert out.shape == (N, C_out, D // 2, H // 2, W // 2), out.shape
    max_err = float(jnp.max(jnp.abs(out - ref)))
    # bf16 patches/weights + bf16 conv intermediate: accepted precision trade.
    assert jnp.allclose(out, ref, atol=4e-2, rtol=4e-2), max_err

    print("KERNEL_OK")
</pallas_src>

<mosaic_0001>
module attributes {stable_mosaic.version = 11 : i64} {
  func.func @conv_stats_kernel(%arg0: i32, %arg1: i32, %arg2: memref<8x32xbf16, #tpu.memory_space<vmem>>, %arg3: memref<1x32x64xbf16, #tpu.memory_space<vmem>>, %arg4: memref<1x8x64xbf16, #tpu.memory_space<vmem>>, %arg5: memref<1x1x16x128xf32, #tpu.memory_space<vmem>>) attributes {dimension_semantics = [#tpu.dimension_semantics<parallel>, #tpu.dimension_semantics<parallel>], iteration_bounds = array<i64: 2, 1>, scalar_prefetch = 0 : i64, scratch_operands = 0 : i64, tpu.core_type = #tpu.core_type<tc>, window_params = [{pipeline_mode = #tpu.pipeline_mode<synchronous>, transform_indices = @transform_0, window_bounds = array<i64: 8, 32>}, {transform_indices = @transform_1, window_bounds = array<i64: 1, 32, 64>}, {transform_indices = @transform_2, window_bounds = array<i64: 1, 8, 64>}, {transform_indices = @transform_3, window_bounds = array<i64: 1, 1, 16, 128>}]} {
    %c0 = arith.constant 0 : index
    %c0_0 = arith.constant 0 : index
    %0 = vector.load %arg2[%c0, %c0_0] : memref<8x32xbf16, #tpu.memory_space<vmem>>, vector<8x32xbf16>
    %c0_1 = arith.constant 0 : index
    %c0_2 = arith.constant 0 : index
    %c0_3 = arith.constant 0 : index
    %1 = vector.load %arg3[%c0_1, %c0_2, %c0_3] : memref<1x32x64xbf16, #tpu.memory_space<vmem>>, vector<1x32x64xbf16>
    %2 = vector.shape_cast %1 : vector<1x32x64xbf16> to vector<32x64xbf16>
    %cst = arith.constant dense<0.000000e+00> : vector<8x64xf32>
    %3 = tpu.matmul %0, %2, %cst {dimension_numbers = #tpu.dot_dimension_numbers<[1], [0], [0], [1], [0, 0, 1, 1], [], []>} : vector<8x32xbf16>, vector<32x64xbf16>, vector<8x64xf32> -> vector<8x64xf32>
    %4 = arith.truncf %3 : vector<8x64xf32> to vector<8x64xbf16>
    %c0_4 = arith.constant 0 : index
    %c0_5 = arith.constant 0 : index
    %c0_6 = arith.constant 0 : index
    %5 = vector.load %arg4[%c0_4, %c0_5, %c0_6] : memref<1x8x64xbf16, #tpu.memory_space<vmem>>, vector<1x8x64xbf16>
    %6 = vector.shape_cast %5 : vector<1x8x64xbf16> to vector<8x64xbf16>
    %7 = vector.shape_cast %4 : vector<8x64xbf16> to vector<1x8x64xbf16>
    tpu.vector_store %arg4[%c0_4, %c0_5, %c0_6], %7 {strides = array<i32>} : memref<1x8x64xbf16, #tpu.memory_space<vmem>>, vector<1x8x64xbf16>,
    %cst_7 = arith.constant dense<0.000000e+00> : vector<8xf32>
    %8 = vector.multi_reduction <add>, %3, %cst_7 [1] : vector<8x64xf32> to vector<8xf32>
    %9 = vector.shape_cast %8 : vector<8xf32> to vector<8x1xf32>
    %10 = arith.mulf %3, %3 : vector<8x64xf32>
    %cst_8 = arith.constant dense<0.000000e+00> : vector<8xf32>
    %11 = vector.multi_reduction <add>, %10, %cst_8 [1] : vector<8x64xf32> to vector<8xf32>
    %12 = vector.shape_cast %11 : vector<8xf32> to vector<8x1xf32>
    %13 = vector.shape_cast %9 : vector<8x1xf32> to vector<8x1xf32>
    %14 = vector.broadcast %13 : vector<8x1xf32> to vector<8x128xf32>
    %c0_9 = arith.constant 0 : index
    %c0_10 = arith.constant 0 : index
    %c0_11 = arith.constant 0 : index
    %c0_12 = arith.constant 0 : index
    %15 = vector.load %arg5[%c0_9, %c0_10, %c0_11, %c0_12] : memref<1x1x16x128xf32, #tpu.memory_space<vmem>>, vector<1x1x8x128xf32>
    %16 = vector.shape_cast %15 : vector<1x1x8x128xf32> to vector<8x128xf32>
    %17 = vector.shape_cast %14 : vector<8x128xf32> to vector<1x1x8x128xf32>
    tpu.vector_store %arg5[%c0_9, %c0_10, %c0_11, %c0_12], %17 {strides = array<i32>} : memref<1x1x16x128xf32, #tpu.memory_space<vmem>>, vector<1x1x8x128xf32>,
    %18 = vector.shape_cast %12 : vector<8x1xf32> to vector<8x1xf32>
    %19 = vector.broadcast %18 : vector<8x1xf32> to vector<8x128xf32>
    %c0_13 = arith.constant 0 : index
    %c0_14 = arith.constant 0 : index
    %c8 = arith.constant 8 : index
    %c0_15 = arith.constant 0 : index
    %20 = vector.load %arg5[%c0_13, %c0_14, %c8, %c0_15] : memref<1x1x16x128xf32, #tpu.memory_space<vmem>>, vector<1x1x8x128xf32>
    %21 = vector.shape_cast %20 : vector<1x1x8x128xf32> to vector<8x128xf32>
    %22 = vector.shape_cast %19 : vector<8x128xf32> to vector<1x1x8x128xf32>
    tpu.vector_store %arg5[%c0_13, %c0_14, %c8, %c0_15], %22 {strides = array<i32>} : memref<1x1x16x128xf32, #tpu.memory_space<vmem>>, vector<1x1x8x128xf32>,
    return
  }
  func.func @transform_0(%arg0: i32, %arg1: i32) -> (i32, i32) {
    %c0_i32 = arith.constant 0 : i32
    %c0_i32_0 = arith.constant 0 : i32
    %c0_i32_1 = arith.constant 0 : i32
    return %c0_i32, %c0_i32_0 : i32, i32
  }
  func.func @transform_1(%arg0: i32, %arg1: i32) -> (i32, i32, i32) {
    %c0_i32 = arith.constant 0 : i32
    %c0_i32_0 = arith.constant 0 : i32
    return %arg0, %c0_i32, %arg1 : i32, i32, i32
  }
  func.func @transform_2(%arg0: i32, %arg1: i32) -> (i32, i32, i32) {
    %c0_i32 = arith.constant 0 : i32
    %c0_i32_0 = arith.constant 0 : i32
    return %arg0, %c0_i32, %arg1 : i32, i32, i32
  }
  func.func @transform_3(%arg0: i32, %arg1: i32) -> (i32, i32, i32, i32) {
    %c0_i32 = arith.constant 0 : i32
    %c0_i32_0 = arith.constant 0 : i32
    %c0_i32_1 = arith.constant 0 : i32
    return %arg0, %arg1, %c0_i32, %c0_i32_0 : i32, i32, i32, i32
  }
}

module attributes {stable_mosaic.version = 11 : i64} {
  func.func @bn_relu_kernel(%arg0: i32, %arg1: i32, %arg2: memref<1x8x64xbf16, #tpu.memory_space<vmem>>, %arg3: memref<8x1xf32, #tpu.memory_space<vmem>>, %arg4: memref<8x1xf32, #tpu.memory_space<vmem>>, %arg5: memref<1x8x64xf32, #tpu.memory_space<vmem>>) attributes {dimension_semantics = [#tpu.dimension_semantics<parallel>, #tpu.dimension_semantics<parallel>], iteration_bounds = array<i64: 2, 1>, scalar_prefetch = 0 : i64, scratch_operands = 0 : i64, tpu.core_type = #tpu.core_type<tc>, window_params = [{transform_indices = @transform_0, window_bounds = array<i64: 1, 8, 64>}, {pipeline_mode = #tpu.pipeline_mode<synchronous>, transform_indices = @transform_1, window_bounds = array<i64: 8, 1>}, {pipeline_mode = #tpu.pipeline_mode<synchronous>, transform_indices = @transform_2, window_bounds = array<i64: 8, 1>}, {transform_indices = @transform_3, window_bounds = array<i64: 1, 8, 64>}]} {
    %c0 = arith.constant 0 : index
    %c0_0 = arith.constant 0 : index
    %c0_1 = arith.constant 0 : index
    %0 = vector.load %arg2[%c0, %c0_0, %c0_1] : memref<1x8x64xbf16, #tpu.memory_space<vmem>>, vector<1x8x64xbf16>
    %1 = vector.shape_cast %0 : vector<1x8x64xbf16> to vector<8x64xbf16>
    %2 = arith.extf %1 : vector<8x64xbf16> to vector<8x64xf32>
    %c0_2 = arith.constant 0 : index
    %c0_3 = arith.constant 0 : index
    %3 = vector.load %arg3[%c0_2, %c0_3] : memref<8x1xf32, #tpu.memory_space<vmem>>, vector<8x1xf32>
    %4 = vector.broadcast %3 : vector<8x1xf32> to vector<8x64xf32>
    %5 = arith.mulf %2, %4 : vector<8x64xf32>
    %c0_4 = arith.constant 0 : index
    %c0_5 = arith.constant 0 : index
    %6 = vector.load %arg4[%c0_4, %c0_5] : memref<8x1xf32, #tpu.memory_space<vmem>>, vector<8x1xf32>
    %7 = vector.broadcast %6 : vector<8x1xf32> to vector<8x64xf32>
    %8 = arith.addf %5, %7 : vector<8x64xf32>
    %cst = arith.constant 0.000000e+00 : f32
    %9 = vector.broadcast %cst : f32 to vector<8x64xf32>
    %10 = arith.maximumf %8, %9 : vector<8x64xf32>
    %c0_6 = arith.constant 0 : index
    %c0_7 = arith.constant 0 : index
    %c0_8 = arith.constant 0 : index
    %11 = vector.load %arg5[%c0_6, %c0_7, %c0_8] : memref<1x8x64xf32, #tpu.memory_space<vmem>>, vector<1x8x64xf32>
    %12 = vector.shape_cast %11 : vector<1x8x64xf32> to vector<8x64xf32>
    %13 = vector.shape_cast %10 : vector<8x64xf32> to vector<1x8x64xf32>
    tpu.vector_store %arg5[%c0_6, %c0_7, %c0_8], %13 {strides = array<i32>} : memref<1x8x64xf32, #tpu.memory_space<vmem>>, vector<1x8x64xf32>,
    return
  }
  func.func @transform_0(%arg0: i32, %arg1: i32) -> (i32, i32, i32) {
    %c0_i32 = arith.constant 0 : i32
    %c0_i32_0 = arith.constant 0 : i32
    return %arg0, %c0_i32, %arg1 : i32, i32, i32
  }
  func.func @transform_1(%arg0: i32, %arg1: i32) -> (i32, i32) {
    %c0_i32 = arith.constant 0 : i32
    %c0_i32_0 = arith.constant 0 : i32
    %c0_i32_1 = arith.constant 0 : i32
    return %c0_i32, %c0_i32_0 : i32, i32
  }
  func.func @transform_2(%arg0: i32, %arg1: i32) -> (i32, i32) {
    %c0_i32 = arith.constant 0 : i32
    %c0_i32_0 = arith.constant 0 : i32
    %c0_i32_1 = arith.constant 0 : i32
    return %c0_i32, %c0_i32_0 : i32, i32
  }
  func.func @transform_3(%arg0: i32, %arg1: i32) -> (i32, i32, i32) {
    %c0_i32 = arith.constant 0 : i32
    %c0_i32_0 = arith.constant 0 : i32
    return %arg0, %c0_i32, %arg1 : i32, i32, i32
  }
}

</mosaic_0001>

<bundles_post_ra>
// kernel: down_forward.2
= control target key start
LH: loop header
LB: loop body
LE: loop exit
PB: predicated region body
PF: predicated region fallthrough
CT: control target
= control target key end

     0   :  { %s530_s12 = smov 0   ;;  %s532_s13 = smov 0   ;;  %s569_s0 = inlined_call_operand.vmem [shape: bf16[8,32], index: 0, kind: input, shape index: {}]   ;;  %s570_s1 = inlined_call_operand.vmem [shape: bf16[2,32,64], index: 1, kind: input, shape index: {}]   ;;  %s571_s2 = inlined_call_operand.vmem [shape: bf16[2,8,64], index: 2, kind: output, shape index: {0}]   ;;  %s572_s3 = inlined_call_operand.vmem [shape: f32[2,1,16,128], index: 3, kind: output, shape index: {1}]  }
   0x1   :  { %s534_s14 = smov 0  }
   0x2 LB: > { %s26_s15 = sadd.s32 1, %s502_s13  ;;  %p432_p0 = scmp.ge.s32.totalorder %s506_s14, 1  ;;  %s506_s14 = sphi %s534_s14, %s14_s14   ;;  %s502_s13 = sphi %s532_s13, %s574_s13   ;;  %s498_s12 = sphi %s530_s12, %s573_s12  }
   0x3   : > { %p28_p1 = scmp.ge.s32.totalorder %s26_s15, 2  ;;  %p161_p2 = scmp.lt.s32.totalorder %s506_s14, 3 }
   0x5   : > { %s576_s15 = smov (%p28_p1, %s26_s15), 0  ;;  %p162_p3 = pnand %p432_p0, %p161_p2 }
   0x6   : > { %p199_p4 = scmp.lt.s32.totalorder (!%p162_p3), %s498_s12, 1  ;;  %v508_v0 = vmov (!%p162_p3), 0.0   ;;  %vm509_vm0 = vmmov (!%p162_p3), 0   ;;  %v224_v3 = vld [vmem:[%s569_s0] sm:$0xf] (!%p162_p3)  ;;  %vm241_vm1 = vcmask (!%p162_p3), 261120  }
   0x7   : > { %165 = sbr.rel (%p162_p3) target bundleno = 385 (0x181), region = 28  ;;  %448 = vmatprep.subr.bf16.mxu0 (!%p162_p3), %v508_v0  ;;  %452 = vmatprep.mubr.msk.bf16.mxu0 (!%p162_p3), %vm509_vm0, %v508_v0  ;;  %vm288_vm2 = vcmask (!%p162_p3), 523264   ;;  %vm286_vm3 = vcmask (!%p162_p3), 519168  }
   0xe   : > { %s578_s12 = smov (!%p199_p4, %s498_s12), 1 }
   0xf   : > { %s443_s16 = sshll.u32 %s578_s12, 4  ;;  %s435_s22 = sshll.u32 %s578_s12, 2 }
  0x10   : > { %s206_s19 = scalar_lea.vmem %s570_s1, %s443_s16  ;;  %s213_s25 = scalar_lea.vmem %s571_s2, %s435_s22 }
  0x11   : > { %v482_v1 = vld [vmem:[%s206_s19] sm:$0xff]   ;;  %v483_v2 = vld [vmem:[%s206_s19 + $0x8] sm:$0xff]   ;;  %s222_s28 = scalar_lea.vmem %s572_s3, %s443_s16 }
  0x12   : > { %449 = vmatpush3.bf16.msra.mxu0 %v482_v1 }
  0x13   : > { %450 = vmatprep.subr.bf16.mxu0 %v508_v0 }
  0x16   : > { %451 = vmatpush3.bf16.msra.mxu0 %v483_v2 }
  0x19   : > { %453 = vmatmul.mubr.msk.bf16.vlgmr.msra.gmra.mrb[0].mxu0 %vm241_vm1, %v224_v3 }
  0xec   : > { %v279_v4 = vpop.f32.mrb[0].mxu0 }
  0xed   : > { %v285_v5 = vpack.c.bf16 %v279_v4, %v279_v4  ;;  %v454_v6 = vpop.f32.mrb[1].mxu0  ;;  %v289_v7 = vsel %vm288_vm2, %v279_v4, 0.0  ;;  %v292_v8 = vmul.f32 %v279_v4, %v279_v4 }
  0xee   : > { %290 = vadd.xlane.f32.xlu0 %v289_v7  ;;  %v282_v9 = vpop.f32.mrb[2].mxu0 }
  0xef   : > { %287 = vst.msk [vmem:[%s213_s25] sm:$0xf] %vm286_vm3, %v285_v5  ;;  %v455_v10 = vpop.f32.mrb[3].mxu0  ;;  %v293_v11 = vsel %vm288_vm2, %v292_v8, 0.0 }
  0xf2   : > { %294 = vadd.xlane.f32.xlu0 %v293_v11 }
 0x17b   : > { %v291_v12 = vpop.xlane.xlu0 %290 }
 0x17c   : > { %296 = vst [vmem:[%s222_s28] sm:$0xff] %v291_v12 }
 0x17f   : > { %v295_v13 = vpop.xlane.xlu0 %294 }
 0x180   : > { %297 = vst [vmem:[%s222_s28 + $0x8] sm:$0xff] %v295_v13 }
 0x181 PF: > { %s14_s14 = sadd.s32 1, %s506_s14   ;;  %s573_s12 = smov %s502_s13 }
 0x182   : > { %p11_p5 = scmp.ge.s32.totalorder %s14_s14, 4   ;;  %s574_s13 = smov %s576_s15 }
 0x184   :  { %13 = sbr.rel (!%p11_p5) target bundleno = 2 (0x2), region = 70 }

// kernel: down_forward.3
= control target key start
LH: loop header
LB: loop body
LE: loop exit
PB: predicated region body
PF: predicated region fallthrough
CT: control target
= control target key end

     0   :  { %s370_s12 = smov 0   ;;  %s372_s13 = smov 0   ;;  %s406_s0 = inlined_call_operand.vmem [shape: bf16[2,8,64], index: 0, kind: input, shape index: {}]   ;;  %s407_s1 = inlined_call_operand.vmem [shape: f32[8,1], index: 1, kind: input, shape index: {}]   ;;  %s408_s2 = inlined_call_operand.vmem [shape: f32[8,1], index: 2, kind: input, shape index: {}]   ;;  %s409_s3 = inlined_call_operand.vmem [shape: f32[2,8,64], index: 3, kind: output, shape index: {}]  }
   0x1   :  { %s374_s14 = smov 0  }
   0x2 LB: > { %s25_s15 = sadd.s32 1, %s343_s13  ;;  %p294_p0 = scmp.ge.s32.totalorder %s347_s14, 1  ;;  %s347_s14 = sphi %s374_s14, %s13_s14   ;;  %s343_s13 = sphi %s372_s13, %s411_s13   ;;  %s339_s12 = sphi %s370_s12, %s410_s12  }
   0x3   : > { %p27_p1 = scmp.ge.s32.totalorder %s25_s15, 2  ;;  %p155_p2 = scmp.lt.s32.totalorder %s347_s14, 3 }
   0x5   : > { %s413_s15 = smov (%p27_p1, %s25_s15), 0  ;;  %p156_p3 = pnand %p294_p0, %p155_p2 }
   0x6   : > { %v199_v0 = vld [vmem:[%s407_s1] sm:$0xff] (!%p156_p3)  ;;  %v349_v1 = vmov (!%p156_p3), 0   ;;  %p183_p4 = scmp.lt.s32.totalorder (!%p156_p3), %s339_s12, 1  ;;  %vm214_vm0 = vcmask (!%p156_p3), 523264  }
   0x7   : > { %159 = sbr.rel (%p156_p3) target bundleno = 145 (0x91), region = 32  ;;  %324 = vset.pattern.permute.xlu0 (!%p156_p3), %v349_v1  ;;  %v206_v2 = vld [vmem:[%s408_s2] sm:$0xff] (!%p156_p3) }
   0x8   : > { %202 = vperm.xlu0 (!%p156_p3), %324, %v199_v0  }
   0xc   : > { %209 = vperm.xlu0 (!%p156_p3), %324, %v206_v2  }
   0xe   : > { %s415_s12 = smov (!%p183_p4, %s339_s12), 1 }
   0xf   : > { %s295_s20 = sshll.u32 %s415_s12, 2  ;;  %s296_s24 = sshll.u32 %s415_s12, 3 }
  0x10   : > { %s189_s23 = scalar_lea.vmem %s406_s0, %s295_s20  ;;  %s196_s27 = scalar_lea.vmem %s409_s3, %s296_s24 }
  0x11   : > { %v197_v3 = vld [vmem:[%s189_s23] sm:$0xf] }
  0x12   : > { %v198_v4 = vunpack.c.l.bf16 %v197_v3 }
  0x87   : > { %v203_v5 = vpop.permute.xlu0 %202 }
  0x88   : > { %v205_v6 = vmul.f32 %v203_v5, %v198_v4 }
  0x8b   : > { %v210_v7 = vpop.permute.xlu0 %209 }
  0x8c   : > { %v212_v8 = vadd.f32 %v210_v7, %v205_v6 }
  0x8e   : > { %v213_v9 = vmax.f32 %v212_v8, 0.0 }
  0x90   : > { %215 = vst.msk [vmem:[%s196_s27] sm:$0xff] %vm214_vm0, %v213_v9 }
  0x91 PF: > { %s13_s14 = sadd.s32 1, %s347_s14   ;;  %s410_s12 = smov %s343_s13 }
  0x92   : > { %p10_p5 = scmp.ge.s32.totalorder %s13_s14, 4   ;;  %s411_s13 = smov %s413_s15 }
  0x94   :  { %12 = sbr.rel (!%p10_p5) target bundleno = 2 (0x2), region = 62 }

</bundles_post_ra>
